<compile_context>
chip_gen: v5e
topology: v5e:2x2
jax: 0.10.0
libtpu: 0.0.40
codegen_flags: <defaults>
</compile_context>

<pallas_src>
import jax
import jax.numpy as jnp
from jax.experimental import pallas as pl
from jax.experimental.pallas import tpu as pltpu


def _round_up(x, m):
    return (x + m - 1) // m * m


def _prod_over_rows(v):
    """Product over axis 0 of an (F, TB) tile -> (1, TB).

    Pairwise tree built from static slices + elementwise multiplies only; the
    few sublane shifts it needs go to the XLU, which rides free under the
    EUP-bound tanh.
    """
    f = v.shape[0]
    f2 = 1
    while f2 < f:
        f2 *= 2
    if f2 != f:
        v = jnp.concatenate(
            [v, jnp.ones((f2 - f, v.shape[1]), v.dtype)], axis=0)
    while v.shape[0] > 1:
        h = v.shape[0] // 2
        v = v[:h, :] * v[h:, :]
    return v  # (1, TB)


def rule_kernel(xt_ref, wt_ref, tt_ref, ot_ref):
    """One batch (lane) tile.

    xt_ref: (F, TB)  batch on lanes (lane-dense)
    wt_ref: (F, C)   rule_weights^T, resident across the grid
    tt_ref: (F, C)   thresholds^T, resident across the grid
    ot_ref: (C, TB)  per-class products, one full-width store per tile
    """
    num_features = xt_ref.shape[0]
    num_classes = wt_ref.shape[1]

    xt = xt_ref[...].astype(jnp.float32)          # (F, TB)
    wt = wt_ref[...].astype(jnp.float32)          # (F, C)
    tt = tt_ref[...].astype(jnp.float32)          # (F, C)

    # Fold the tanh half-angle scale into the parameters once per tile:
    #   z/2 = (x - t) * (0.5 * w) = x * w_half + b_half
    w_half = 0.5 * wt                              # (F, C)
    b_half = -(tt * w_half)                        # (F, C)

    # sigmoid(z) = 0.5 * (tanh(z/2) + 1).  Defer the 0.5**F prefactor to one
    # per-output multiply when prod(1 + tanh) <= 2**F stays safely in f32.
    defer_half = num_features <= 64

    cols = []
    # num_classes is small and static -> plain unroll.
    # TODO(synk): for large num_classes use a bounded unroll to limit code size.
    for c in range(num_classes):
        # Per-class params enter as (F, 1) lane-broadcast columns (cheap splat).
        z = xt * w_half[:, c:c + 1] + b_half[:, c:c + 1]     # (F, TB)  VPU
        th = jnp.tanh(z)                                     # (F, TB)  EUP (binding slot)
        s = (th + 1.0) if defer_half else (0.5 * th + 0.5)   # VPU
        cols.append(_prod_over_rows(s))                      # (1, TB)

    out = jnp.concatenate(cols, axis=0)                      # (C, TB)
    if defer_half:
        out = out * (0.5 ** num_features)
    ot_ref[...] = out.astype(ot_ref.dtype)                   # single lane-dense store


def _pick_batch_tile(batch, num_features, num_classes, vmem_budget_bytes):
    """Largest lane-tile (multiple of 128) whose pipeline footprint fits the budget.

    f32 bytes; BlockSpec double-buffers the streamed operands, and the kernel
    keeps ~3 extra live (F, TB) temporaries (z / tanh / tree partials).
    """
    fixed = 2 * 2 * num_classes * num_features * 4            # resident w^T, t^T
    per_col = (2 * num_features          # x^T double-buffered
               + 3 * num_features        # in-kernel live temporaries
               + 2 * num_classes) * 4    # out^T double-buffered
    tb = (int(vmem_budget_bytes * 0.6) - fixed) // max(per_col, 1)
    # TODO(synk): if `fixed` alone exceeds the budget (extreme C*F), switch to
    # the F-grid-axis log-sigmoid variant instead of forcing a 128 tile.
    tb = max(128, min(tb, 8 * 1024))
    tb = (tb // 128) * 128
    # v7x megacore: keep >= 4 grid steps when the batch allows it, so both
    # TensorCores get work and the DMA pipeline has overlap.
    if batch >= 4 * 128:
        tb = min(tb, _round_up(-(-batch // 4), 128))
    return tb


def rule_based_layer(x, rule_weights, thresholds, *,
                     vmem_limit_bytes=32 * 1024 * 1024):
    B, F = x.shape
    C, F2 = rule_weights.shape
    assert F == F2 and thresholds.shape == (C, F)

    tb = min(_pick_batch_tile(B, F, C, vmem_limit_bytes), _round_up(B, 128))
    B_pad = _round_up(B, tb)

    # Lane-dense layout plumbing (transpose only; all arithmetic folds stay
    # in-kernel per the pre-scale anti-pattern).
    xt = x.T                                   # (F, B) — batch on lanes
    if B_pad != B:
        xt = jnp.pad(xt, ((0, 0), (0, B_pad - B)))
    wt = rule_weights.T                        # (F, C)
    tt = thresholds.T                          # (F, C)

    out_t = pl.pallas_call(
        rule_kernel,
        out_shape=jax.ShapeDtypeStruct((C, B_pad), x.dtype),
        grid=(B_pad // tb,),
        in_specs=[
            pl.BlockSpec((F, tb), lambda i: (0, i)),   # x^T: streamed per lane tile
            pl.BlockSpec((F, C), lambda i: (0, 0)),    # rule_weights^T: resident
            pl.BlockSpec((F, C), lambda i: (0, 0)),    # thresholds^T: resident
        ],
        out_specs=pl.BlockSpec((C, tb), lambda i: (0, i)),
        compiler_params=pltpu.CompilerParams(
            dimension_semantics=("parallel",),         # megacore shard on v7x
            vmem_limit_bytes=vmem_limit_bytes,
        ),
    )(xt, wt, tt)
    return out_t[:, :B].T                       # (B, C) = torch.stack(..., dim=1)


def reference(x, rule_weights, thresholds):
    z = (x[:, None, :] - thresholds[None, :, :]) * rule_weights[None, :, :]
    return jnp.prod(jax.nn.sigmoid(z), axis=-1)


if __name__ == "__main__":
    key = jax.random.PRNGKey(0)
    k_x, k_w, k_t = jax.random.split(key, 3)

    batch = 8
    num_features = 16
    num_classes = 4

    x = jax.random.normal(k_x, (batch, num_features), dtype=jnp.float32)
    rule_weights = jax.random.normal(k_w, (num_classes, num_features),
                                     dtype=jnp.float32)
    thresholds = jax.random.normal(k_t, (num_classes, num_features),
                                   dtype=jnp.float32)

    out = jax.block_until_ready(rule_based_layer(x, rule_weights, thresholds))
    ref = jax.block_until_ready(reference(x, rule_weights, thresholds))

    assert out.shape == (batch, num_classes), out.shape
    assert jnp.allclose(out, ref, atol=1e-5, rtol=1e-5), jnp.max(jnp.abs(out - ref))
    print("KERNEL_OK")
</pallas_src>

<mosaic_0001>
module attributes {stable_mosaic.version = 11 : i64} {
  func.func @rule_kernel(%arg0: i32, %arg1: memref<16x128xf32, #tpu.memory_space<vmem>>, %arg2: memref<16x4xf32, #tpu.memory_space<vmem>>, %arg3: memref<16x4xf32, #tpu.memory_space<vmem>>, %arg4: memref<4x128xf32, #tpu.memory_space<vmem>>) attributes {dimension_semantics = [#tpu.dimension_semantics<parallel>], iteration_bounds = array<i64: 1>, scalar_prefetch = 0 : i64, scratch_operands = 0 : i64, tpu.core_type = #tpu.core_type<tc>, window_params = [{transform_indices = @transform_0, window_bounds = array<i64: 16, 128>}, {pipeline_mode = #tpu.pipeline_mode<synchronous>, transform_indices = @transform_1, window_bounds = array<i64: 16, 4>}, {pipeline_mode = #tpu.pipeline_mode<synchronous>, transform_indices = @transform_2, window_bounds = array<i64: 16, 4>}, {transform_indices = @transform_3, window_bounds = array<i64: 4, 128>}]} {
    %c0 = arith.constant 0 : index
    %c0_0 = arith.constant 0 : index
    %0 = vector.load %arg1[%c0, %c0_0] : memref<16x128xf32, #tpu.memory_space<vmem>>, vector<16x128xf32>
    %c0_1 = arith.constant 0 : index
    %c0_2 = arith.constant 0 : index
    %1 = vector.load %arg2[%c0_1, %c0_2] : memref<16x4xf32, #tpu.memory_space<vmem>>, vector<16x4xf32>
    %c0_3 = arith.constant 0 : index
    %c0_4 = arith.constant 0 : index
    %2 = vector.load %arg3[%c0_3, %c0_4] : memref<16x4xf32, #tpu.memory_space<vmem>>, vector<16x4xf32>
    %cst = arith.constant 5.000000e-01 : f32
    %3 = vector.broadcast %cst : f32 to vector<16x4xf32>
    %4 = arith.mulf %3, %1 : vector<16x4xf32>
    %5 = arith.mulf %2, %4 : vector<16x4xf32>
    %cst_5 = arith.constant 0.000000e+00 : f32
    %6 = vector.broadcast %cst_5 : f32 to vector<16x4xf32>
    %7 = arith.subf %6, %5 : vector<16x4xf32>
    %8 = vector.extract_strided_slice %4 {offsets = [0, 0], sizes = [16, 1], strides = [1, 1]} : vector<16x4xf32> to vector<16x1xf32>
    %9 = vector.broadcast %8 : vector<16x1xf32> to vector<16x128xf32>
    %10 = arith.mulf %0, %9 : vector<16x128xf32>
    %11 = vector.extract_strided_slice %7 {offsets = [0, 0], sizes = [16, 1], strides = [1, 1]} : vector<16x4xf32> to vector<16x1xf32>
    %12 = vector.broadcast %11 : vector<16x1xf32> to vector<16x128xf32>
    %13 = arith.addf %10, %12 : vector<16x128xf32>
    %14 = math.tanh %13 : vector<16x128xf32>
    %cst_6 = arith.constant 1.000000e+00 : f32
    %15 = vector.broadcast %cst_6 : f32 to vector<16x128xf32>
    %16 = arith.addf %14, %15 : vector<16x128xf32>
    %17 = vector.extract_strided_slice %16 {offsets = [0, 0], sizes = [8, 128], strides = [1, 1]} : vector<16x128xf32> to vector<8x128xf32>
    %18 = vector.extract_strided_slice %16 {offsets = [8, 0], sizes = [8, 128], strides = [1, 1]} : vector<16x128xf32> to vector<8x128xf32>
    %19 = arith.mulf %17, %18 : vector<8x128xf32>
    %20 = vector.extract_strided_slice %19 {offsets = [0, 0], sizes = [4, 128], strides = [1, 1]} : vector<8x128xf32> to vector<4x128xf32>
    %21 = vector.extract_strided_slice %19 {offsets = [4, 0], sizes = [4, 128], strides = [1, 1]} : vector<8x128xf32> to vector<4x128xf32>
    %22 = arith.mulf %20, %21 : vector<4x128xf32>
    %23 = vector.extract_strided_slice %22 {offsets = [0, 0], sizes = [2, 128], strides = [1, 1]} : vector<4x128xf32> to vector<2x128xf32>
    %24 = vector.extract_strided_slice %22 {offsets = [2, 0], sizes = [2, 128], strides = [1, 1]} : vector<4x128xf32> to vector<2x128xf32>
    %25 = arith.mulf %23, %24 : vector<2x128xf32>
    %26 = vector.extract_strided_slice %25 {offsets = [0, 0], sizes = [1, 128], strides = [1, 1]} : vector<2x128xf32> to vector<1x128xf32>
    %27 = vector.extract_strided_slice %25 {offsets = [1, 0], sizes = [1, 128], strides = [1, 1]} : vector<2x128xf32> to vector<1x128xf32>
    %28 = arith.mulf %26, %27 : vector<1x128xf32>
    %29 = vector.extract_strided_slice %4 {offsets = [0, 1], sizes = [16, 1], strides = [1, 1]} : vector<16x4xf32> to vector<16x1xf32>
    %30 = vector.broadcast %29 : vector<16x1xf32> to vector<16x128xf32>
    %31 = arith.mulf %0, %30 : vector<16x128xf32>
    %32 = vector.extract_strided_slice %7 {offsets = [0, 1], sizes = [16, 1], strides = [1, 1]} : vector<16x4xf32> to vector<16x1xf32>
    %33 = vector.broadcast %32 : vector<16x1xf32> to vector<16x128xf32>
    %34 = arith.addf %31, %33 : vector<16x128xf32>
    %35 = math.tanh %34 : vector<16x128xf32>
    %cst_7 = arith.constant 1.000000e+00 : f32
    %36 = vector.broadcast %cst_7 : f32 to vector<16x128xf32>
    %37 = arith.addf %35, %36 : vector<16x128xf32>
    %38 = vector.extract_strided_slice %37 {offsets = [0, 0], sizes = [8, 128], strides = [1, 1]} : vector<16x128xf32> to vector<8x128xf32>
    %39 = vector.extract_strided_slice %37 {offsets = [8, 0], sizes = [8, 128], strides = [1, 1]} : vector<16x128xf32> to vector<8x128xf32>
    %40 = arith.mulf %38, %39 : vector<8x128xf32>
    %41 = vector.extract_strided_slice %40 {offsets = [0, 0], sizes = [4, 128], strides = [1, 1]} : vector<8x128xf32> to vector<4x128xf32>
    %42 = vector.extract_strided_slice %40 {offsets = [4, 0], sizes = [4, 128], strides = [1, 1]} : vector<8x128xf32> to vector<4x128xf32>
    %43 = arith.mulf %41, %42 : vector<4x128xf32>
    %44 = vector.extract_strided_slice %43 {offsets = [0, 0], sizes = [2, 128], strides = [1, 1]} : vector<4x128xf32> to vector<2x128xf32>
    %45 = vector.extract_strided_slice %43 {offsets = [2, 0], sizes = [2, 128], strides = [1, 1]} : vector<4x128xf32> to vector<2x128xf32>
    %46 = arith.mulf %44, %45 : vector<2x128xf32>
    %47 = vector.extract_strided_slice %46 {offsets = [0, 0], sizes = [1, 128], strides = [1, 1]} : vector<2x128xf32> to vector<1x128xf32>
    %48 = vector.extract_strided_slice %46 {offsets = [1, 0], sizes = [1, 128], strides = [1, 1]} : vector<2x128xf32> to vector<1x128xf32>
    %49 = arith.mulf %47, %48 : vector<1x128xf32>
    %50 = vector.extract_strided_slice %4 {offsets = [0, 2], sizes = [16, 1], strides = [1, 1]} : vector<16x4xf32> to vector<16x1xf32>
    %51 = vector.broadcast %50 : vector<16x1xf32> to vector<16x128xf32>
    %52 = arith.mulf %0, %51 : vector<16x128xf32>
    %53 = vector.extract_strided_slice %7 {offsets = [0, 2], sizes = [16, 1], strides = [1, 1]} : vector<16x4xf32> to vector<16x1xf32>
    %54 = vector.broadcast %53 : vector<16x1xf32> to vector<16x128xf32>
    %55 = arith.addf %52, %54 : vector<16x128xf32>
    %56 = math.tanh %55 : vector<16x128xf32>
    %cst_8 = arith.constant 1.000000e+00 : f32
    %57 = vector.broadcast %cst_8 : f32 to vector<16x128xf32>
    %58 = arith.addf %56, %57 : vector<16x128xf32>
    %59 = vector.extract_strided_slice %58 {offsets = [0, 0], sizes = [8, 128], strides = [1, 1]} : vector<16x128xf32> to vector<8x128xf32>
    %60 = vector.extract_strided_slice %58 {offsets = [8, 0], sizes = [8, 128], strides = [1, 1]} : vector<16x128xf32> to vector<8x128xf32>
    %61 = arith.mulf %59, %60 : vector<8x128xf32>
    %62 = vector.extract_strided_slice %61 {offsets = [0, 0], sizes = [4, 128], strides = [1, 1]} : vector<8x128xf32> to vector<4x128xf32>
    %63 = vector.extract_strided_slice %61 {offsets = [4, 0], sizes = [4, 128], strides = [1, 1]} : vector<8x128xf32> to vector<4x128xf32>
    %64 = arith.mulf %62, %63 : vector<4x128xf32>
    %65 = vector.extract_strided_slice %64 {offsets = [0, 0], sizes = [2, 128], strides = [1, 1]} : vector<4x128xf32> to vector<2x128xf32>
    %66 = vector.extract_strided_slice %64 {offsets = [2, 0], sizes = [2, 128], strides = [1, 1]} : vector<4x128xf32> to vector<2x128xf32>
    %67 = arith.mulf %65, %66 : vector<2x128xf32>
    %68 = vector.extract_strided_slice %67 {offsets = [0, 0], sizes = [1, 128], strides = [1, 1]} : vector<2x128xf32> to vector<1x128xf32>
    %69 = vector.extract_strided_slice %67 {offsets = [1, 0], sizes = [1, 128], strides = [1, 1]} : vector<2x128xf32> to vector<1x128xf32>
    %70 = arith.mulf %68, %69 : vector<1x128xf32>
    %71 = vector.extract_strided_slice %4 {offsets = [0, 3], sizes = [16, 1], strides = [1, 1]} : vector<16x4xf32> to vector<16x1xf32>
    %72 = vector.broadcast %71 : vector<16x1xf32> to vector<16x128xf32>
    %73 = arith.mulf %0, %72 : vector<16x128xf32>
    %74 = vector.extract_strided_slice %7 {offsets = [0, 3], sizes = [16, 1], strides = [1, 1]} : vector<16x4xf32> to vector<16x1xf32>
    %75 = vector.broadcast %74 : vector<16x1xf32> to vector<16x128xf32>
    %76 = arith.addf %73, %75 : vector<16x128xf32>
    %77 = math.tanh %76 : vector<16x128xf32>
    %cst_9 = arith.constant 1.000000e+00 : f32
    %78 = vector.broadcast %cst_9 : f32 to vector<16x128xf32>
    %79 = arith.addf %77, %78 : vector<16x128xf32>
    %80 = vector.extract_strided_slice %79 {offsets = [0, 0], sizes = [8, 128], strides = [1, 1]} : vector<16x128xf32> to vector<8x128xf32>
    %81 = vector.extract_strided_slice %79 {offsets = [8, 0], sizes = [8, 128], strides = [1, 1]} : vector<16x128xf32> to vector<8x128xf32>
    %82 = arith.mulf %80, %81 : vector<8x128xf32>
    %83 = vector.extract_strided_slice %82 {offsets = [0, 0], sizes = [4, 128], strides = [1, 1]} : vector<8x128xf32> to vector<4x128xf32>
    %84 = vector.extract_strided_slice %82 {offsets = [4, 0], sizes = [4, 128], strides = [1, 1]} : vector<8x128xf32> to vector<4x128xf32>
    %85 = arith.mulf %83, %84 : vector<4x128xf32>
    %86 = vector.extract_strided_slice %85 {offsets = [0, 0], sizes = [2, 128], strides = [1, 1]} : vector<4x128xf32> to vector<2x128xf32>
    %87 = vector.extract_strided_slice %85 {offsets = [2, 0], sizes = [2, 128], strides = [1, 1]} : vector<4x128xf32> to vector<2x128xf32>
    %88 = arith.mulf %86, %87 : vector<2x128xf32>
    %89 = vector.extract_strided_slice %88 {offsets = [0, 0], sizes = [1, 128], strides = [1, 1]} : vector<2x128xf32> to vector<1x128xf32>
    %90 = vector.extract_strided_slice %88 {offsets = [1, 0], sizes = [1, 128], strides = [1, 1]} : vector<2x128xf32> to vector<1x128xf32>
    %91 = arith.mulf %89, %90 : vector<1x128xf32>
    %92 = tpu.concatenate %28, %49, %70, %91 in 0 : vector<1x128xf32>, vector<1x128xf32>, vector<1x128xf32>, vector<1x128xf32> -> vector<4x128xf32>
    %cst_10 = arith.constant 1.52587891E-5 : f32
    %93 = vector.broadcast %cst_10 : f32 to vector<4x128xf32>
    %94 = arith.mulf %92, %93 : vector<4x128xf32>
    %c0_11 = arith.constant 0 : index
    %c0_12 = arith.constant 0 : index
    %95 = vector.load %arg4[%c0_11, %c0_12] : memref<4x128xf32, #tpu.memory_space<vmem>>, vector<4x128xf32>
    tpu.vector_store %arg4[%c0_11, %c0_12], %94 {strides = array<i32>} : memref<4x128xf32, #tpu.memory_space<vmem>>, vector<4x128xf32>,
    return
  }
  func.func @transform_0(%arg0: i32) -> (i32, i32) {
    %c0_i32 = arith.constant 0 : i32
    %c0_i32_0 = arith.constant 0 : i32
    return %c0_i32, %arg0 : i32, i32
  }
  func.func @transform_1(%arg0: i32) -> (i32, i32) {
    %c0_i32 = arith.constant 0 : i32
    %c0_i32_0 = arith.constant 0 : i32
    %c0_i32_1 = arith.constant 0 : i32
    return %c0_i32, %c0_i32_0 : i32, i32
  }
  func.func @transform_2(%arg0: i32) -> (i32, i32) {
    %c0_i32 = arith.constant 0 : i32
    %c0_i32_0 = arith.constant 0 : i32
    %c0_i32_1 = arith.constant 0 : i32
    return %c0_i32, %c0_i32_0 : i32, i32
  }
  func.func @transform_3(%arg0: i32) -> (i32, i32) {
    %c0_i32 = arith.constant 0 : i32
    %c0_i32_0 = arith.constant 0 : i32
    return %c0_i32, %arg0 : i32, i32
  }
}

</mosaic_0001>

<bundles_post_ra>
// kernel: tpu_custom_call.1
= control target key start
LH: loop header
LB: loop body
LE: loop exit
PB: predicated region body
PF: predicated region fallthrough
CT: control target
= control target key end

     0   :  { %v271_v3 = vmov 0   ;;  %s317_s0 = inlined_call_operand.vmem [shape: f32[16,128], index: 0, kind: input, shape index: {}]   ;;  %s318_s1 = inlined_call_operand.vmem [shape: f32[16,4], index: 1, kind: input, shape index: {}]   ;;  %s319_s2 = inlined_call_operand.vmem [shape: f32[16,4], index: 2, kind: input, shape index: {}]   ;;  %s320_s3 = inlined_call_operand.hbm [shape: f32[4,128], index: 3, kind: output, shape index: {}]  }
   0x1   :  { %v17_v0 = vld [vmem:[%s318_s1] sm:$0xff]  ;;  %v18_v2 = vld [vmem:[%s318_s1 + $0x8] sm:$0xff]  ;;  %217 = vset.pattern.permute.xlu0 %v271_v3  ;;  %218 = vset.pattern.permute.xlu1 %v271_v3 }
   0x2   :  { %v19_v1 = vld [vmem:[%s319_s2] sm:$0xff]  ;;  %v21_v4 = vmul.f32 0.5, %v17_v0 }
   0x3   :  { %8 = vsyncpa [#allocation3], 0  ;;  %v272_v5 = vmov 1   ;;  %v22_v7 = vmul.f32 0.5, %v18_v2  ;;  %v20_v8 = vld [vmem:[%s319_s2 + $0x8] sm:$0xff]  ;;  %v273_v12 = vmov 2  }
   0x4   :  { %219 = vset.pattern.permute.xlu2 %v272_v5  ;;  %29 = vperm.xlu0 %217, %v21_v4   ;;  %v23_v6 = vmul.f32 %v21_v4, %v19_v1  ;;  %v274_v13 = vmov 3   ;;  %v15_v21 = vld [vmem:[%s317_s0] sm:$0xff]  ;;  %v16_v25 = vld [vmem:[%s317_s0 + $0x8] sm:$0xff]  ;;  %vm188_vm0 = vcmask 1040384   ;;  %vm190_vm1 = vcmask 1041408   ;;  %s275_s0 = smov [#allocation2]  }
   0x5   :  { %69 = vperm.xlu2 %219, %v21_v4   ;;  %v24_v10 = vmul.f32 %v22_v7, %v20_v8  ;;  %vm192_vm2 = vcmask 1042432   ;;  %s201_s22 = sshll.u32 %s275_s0, 4  ;;  %s203_s25 = sshll.u32 %s320_s3, 4  ;;  %s202_s22 = int_to_ptr.vmem [resolvable:$true] %s201_s22  ;;  %s204_s25 = int_to_ptr.hbm [resolvable:$true] %s203_s25 }
   0x6   :  { %v25_v9 = vsub.f32 0.0, %v23_v6 }
   0x7   :  { %v26_v11 = vsub.f32 0.0, %v24_v10 }
   0x8   :  { %41 = vperm.xlu1 %218, %v25_v9  }
   0xc   :  { %34 = vperm.xlu0 %217, %v22_v7  }
   0xd   :  { %73 = vperm.xlu2 %219, %v22_v7  }
  0x10   :  { %46 = vperm.xlu1 %218, %v26_v11  }
  0x14   :  { %220 = vset.pattern.permute.xlu0 %v273_v12 }
  0x15   :  { %79 = vperm.xlu2 %219, %v25_v9   ;;  %106 = vperm.xlu0 %220, %v21_v4  }
  0x18   :  { %221 = vset.pattern.permute.xlu1 %v273_v12 }
  0x19   :  { %110 = vperm.xlu1 %221, %v22_v7  }
  0x1d   :  { %223 = vset.pattern.permute.xlu2 %v274_v13  ;;  %224 = vset.pattern.permute.xlu0 %v274_v13 }
  0x1e   :  { %143 = vperm.xlu2 %223, %v21_v4   ;;  %147 = vperm.xlu0 %224, %v22_v7  }
  0x21   :  { %222 = vset.pattern.permute.xlu1 %v272_v5 }
  0x22   :  { %83 = vperm.xlu1 %222, %v26_v11  }
  0x26   :  { %226 = vset.pattern.permute.xlu2 %v273_v12 }
  0x27   :  { %120 = vperm.xlu2 %226, %v26_v11  }
  0x2a   :  { %225 = vset.pattern.permute.xlu1 %v273_v12 }
  0x2b   :  { %116 = vperm.xlu1 %225, %v25_v9  }
  0x2f   :  { %228 = vset.pattern.permute.xlu2 %v274_v13 }
  0x30   :  { %157 = vperm.xlu2 %228, %v26_v11  }
  0x33   :  { %227 = vset.pattern.permute.xlu1 %v274_v13 }
  0x34   :  { %153 = vperm.xlu1 %227, %v25_v9  }
  0x5f   :  { %v70_v14 = vpop.permute.xlu2 %69 }
  0x60   :  { %v76_v24 = vmul.f32 %v70_v14, %v15_v21 }
  0x67   :  { %v74_v15 = vpop.permute.xlu2 %73 }
  0x68   :  { %v77_v29 = vmul.f32 %v74_v15, %v16_v25 }
  0x6f   :  { %v80_v19 = vpop.permute.xlu2 %79 }
  0x70   :  { %v86_v27 = vadd.f32 %v80_v19, %v76_v24 }
  0x72   :  { %229 = vtanh.f32 %v86_v27 }
  0x76   :  { %v30_v17 = vpop.permute.xlu0 %29 }
  0x77   :  { %v37_v30 = vmul.f32 %v30_v17, %v15_v21 }
  0x78   :  { %v144_v23 = vpop.permute.xlu2 %143  ;;  %v230_v40 = vpop.eup %229 }
  0x79   :  { %v90_v44 = vadd.f32 1.0, %v230_v40  ;;  %v150_v56 = vmul.f32 %v144_v23, %v15_v21 }
  0x7a   :  { %v42_v16 = vpop.permute.xlu1 %41 }
  0x7b   :  { %v49_v36 = vadd.f32 %v42_v16, %v37_v30 }
  0x7e   :  { %v35_v20 = vpop.permute.xlu0 %34 }
  0x7f   :  { %v38_v28 = vmul.f32 %v35_v20, %v16_v25 }
  0x81   :  { %v121_v35 = vpop.permute.xlu2 %120 }
  0x82   :  { %v47_v18 = vpop.permute.xlu1 %46 }
  0x83   :  { %v50_v32 = vadd.f32 %v47_v18, %v38_v28 }
  0x87   :  { %v107_v26 = vpop.permute.xlu0 %106 }
  0x88   :  { %v113_v38 = vmul.f32 %v107_v26, %v15_v21 }
  0x8a   :  { %v158_v47 = vpop.permute.xlu2 %157 }
  0x8b   :  { %v111_v22 = vpop.permute.xlu1 %110 }
  0x8c   :  { %v114_v34 = vmul.f32 %v111_v22, %v16_v25 }
  0x8e   :  { %v124_v37 = vadd.f32 %v121_v35, %v114_v34 }
  0x90   :  { %v148_v39 = vpop.permute.xlu0 %147 }
  0x91   :  { %v151_v43 = vmul.f32 %v148_v39, %v16_v25 }
  0x93   :  { %v161_v51 = vadd.f32 %v158_v47, %v151_v43 }
  0x94   :  { %v84_v31 = vpop.permute.xlu1 %83 }
  0x95   :  { %v87_v33 = vadd.f32 %v84_v31, %v77_v29 }
  0x97   :  { %231 = vtanh.f32 %v87_v33 }
  0x98   :  { %233 = vtanh.f32 %v50_v32 }
  0x99   :  { %235 = vtanh.f32 %v49_v36 }
  0x9a   :  { %237 = vtanh.f32 %v124_v37 }
  0x9d   :  { %v232_v41 = vpop.eup %231  ;;  %v117_v42 = vpop.permute.xlu1 %116 }
  0x9e   :  { %v91_v45 = vadd.f32 1.0, %v232_v41  ;;  %v123_v46 = vadd.f32 %v117_v42, %v113_v38  ;;  %v234_v48 = vpop.eup %233 }
  0x9f   :  { %v236_v50 = vpop.eup %235  ;;  %v54_v52 = vadd.f32 1.0, %v234_v48 }
  0xa0   :  { %v92_v49 = vmul.f32 %v91_v45, %v90_v44  ;;  %239 = vtanh.f32 %v123_v46  ;;  %v238_v53 = vpop.eup %237  ;;  %v53_v54 = vadd.f32 1.0, %v236_v50 }
  0xa1   :  { %241 = vtanh.f32 %v161_v51  ;;  %v128_v60 = vadd.f32 1.0, %v238_v53 }
  0xa2   :  { %v94_v55 = vrot.slane %v92_v49, 4  ;;  %v55_v58 = vmul.f32 %v54_v52, %v53_v54 }
  0xa4   :  { %v96_v63 = vmul.f32 %v94_v55, %v92_v49  ;;  %v57_v1 = vrot.slane %v55_v58, 4 }
  0xa6   :  { %v240_v57 = vpop.eup %239  ;;  %v154_v59 = vpop.permute.xlu1 %153  ;;  %v98_v4 = vrot.slane %v96_v63, 2  ;;  %v59_v6 = vmul.f32 %v57_v1, %v55_v58 }
  0xa7   :  { %v127_v61 = vadd.f32 1.0, %v240_v57  ;;  %v160_v62 = vadd.f32 %v154_v59, %v150_v56  ;;  %v242_v2 = vpop.eup %241 }
  0xa8   :  { %v165_v7 = vadd.f32 1.0, %v242_v2  ;;  %v100_v10 = vmul.f32 %v98_v4, %v96_v63  ;;  %v61_v13 = vrot.slane %v59_v6, 2 }
  0xa9   :  { %v129_v0 = vmul.f32 %v128_v60, %v127_v61  ;;  %243 = vtanh.f32 %v160_v62 }
  0xaa   :  { %v102_v15 = vrot.slane %v100_v10, 1  ;;  %v63_v18 = vmul.f32 %v61_v13, %v59_v6 }
  0xab   :  { %v131_v3 = vrot.slane %v129_v0, 4 }
  0xac   :  { %v104_v20 = vmul.f32 %v102_v15, %v100_v10  ;;  %v65_v23 = vrot.slane %v63_v18, 1 }
  0xad   :  { %v133_v5 = vmul.f32 %v131_v3, %v129_v0 }
  0xae   :  { %v180_v25 = vrot.slane %v104_v20, 7  ;;  %v67_v28 = vmul.f32 %v65_v23, %v63_v18 }
  0xaf   :  { %v244_v8 = vpop.eup %243  ;;  %v135_v9 = vrot.slane %v133_v5, 2 }
  0xb0   :  { %v164_v11 = vadd.f32 1.0, %v244_v8  ;;  %v189_v31 = vsel %vm188_vm0, %v67_v28, %v180_v25 }
  0xb1   :  { %v137_v12 = vmul.f32 %v135_v9, %v133_v5 }
  0xb2   :  { %v166_v14 = vmul.f32 %v165_v7, %v164_v11 }
  0xb3   :  { %v139_v17 = vrot.slane %v137_v12, 1 }
  0xb4   :  { %v168_v16 = vrot.slane %v166_v14, 4 }
  0xb5   :  { %v141_v22 = vmul.f32 %v139_v17, %v137_v12 }
  0xb6   :  { %v170_v19 = vmul.f32 %v168_v16, %v166_v14 }
  0xb7   :  { %v183_v27 = vrot.slane %v141_v22, 6 }
  0xb8   :  { %v172_v21 = vrot.slane %v170_v19, 2 }
  0xb9   :  { %v191_v32 = vsel %vm190_vm1, %v189_v31, %v183_v27 }
  0xba   :  { %v174_v24 = vmul.f32 %v172_v21, %v170_v19 }
  0xbc   :  { %v176_v26 = vrot.slane %v174_v24, 1 }
  0xbe   :  { %v178_v29 = vmul.f32 %v176_v26, %v174_v24 }
  0xc0   :  { %v186_v30 = vrot.slane %v178_v29, 5 }
  0xc2   :  { %v193_v33 = vsel %vm192_vm2, %v191_v32, %v186_v30 }
  0xc3   :  { %v194_v34 = vmul.f32 1.5258789e-05, %v193_v33 }
  0xc5   :  { %195 = vst [vmem:[#allocation2] sm:$0xf] %v194_v34 }
  0xc6   :  { %206 = dma.vmem_to_hbm [thread:$0]  %s202_s22, 64, %s204_s25, [#allocation3]  }
  0xc7   :  { %269 = dma.done.wait [#allocation3], 64  }
  0xc8   :  { %270 = vsyncadd [#allocation3], 4294967232 }
  0xc9   :  { %211 = vsyncpa [#allocation3], 1 }

</bundles_post_ra>
